<compile_context>
chip_gen: v6e
topology: v6e:2x2x1
jax: 0.10.0
libtpu: 0.0.40
codegen_flags: <defaults>
</compile_context>

<pallas_src>
import functools

import jax
import jax.numpy as jnp
from jax.experimental import pallas as pl
from jax.experimental.pallas import tpu as pltpu

_LANE = 128


def _round_up(x, m):
    return ((x + m - 1) // m) * m


def _vmem_capacity_bytes():
    """Physical VMEM of the current TPU generation, conservative fallback."""
    try:
        cap = getattr(pltpu.get_tpu_info(), "vmem_capacity_bytes", None)
        if cap:
            return int(cap)
    except Exception:
        pass
    return 64 << 20   # v7x per-TensorCore VMEM -- smallest across v5e/v6e/v7x


def _pfn_kernel(x_ref, w_ref, b_ref, *o_refs, last_vfe, concat_output,
                matmul_dtype):
    # x_ref: (tn, P, Cin)   VMEM tile of input pillars
    # w_ref: (Cin, Cout)    linear weight with the BN scale pre-folded
    # b_ref: (1, Cout)      folded BN bias (or linear bias)
    # o_refs:
    #   last_vfe            -> ((tn, Cout),)
    #   concat_output       -> ((tn, P, 2*Cout),)
    #   else (split)        -> ((tn, P, Cout), (tn, Cout))
    tn, P, cin = x_ref.shape
    cout = w_ref.shape[1]

    # Single long-M MXU matmul: (tn*P, Cin) x (Cin, Cout).  Collapsing only
    # the leading dims keeps the lane (minor) dim unchanged -> layout cheap.
    x2 = x_ref[...].reshape(tn * P, cin)
    w = w_ref[...]
    if matmul_dtype is not None:
        # bf16 operands cut the f32 multi-pass MXU cost ~3x (v6e/v7x); K=Cin
        # is tiny and accumulation stays f32, so accuracy loss is negligible.
        x2 = x2.astype(matmul_dtype)
        w = w.astype(matmul_dtype)
    y2 = jnp.dot(x2, w, preferred_element_type=jnp.float32)

    # BN scale is folded into W host-side; only the per-channel bias remains.
    y2 = jnp.maximum(y2 + b_ref[...], 0.0)

    y3 = y2.reshape(tn, P, cout)
    y_max = jnp.max(y3, axis=1, keepdims=True)            # (tn, 1, Cout)

    if last_vfe:
        o_refs[0][...] = y_max.reshape(tn, cout).astype(o_refs[0].dtype)
    elif concat_output:
        # One pre-concatenated full-block store (no lane-sub-slice stores).
        cat = jnp.concatenate(
            [y3, jnp.broadcast_to(y_max, (tn, P, cout))], axis=-1)
        o_refs[0][...] = cat.astype(o_refs[0].dtype)
    else:
        # No P-way replication of the per-pillar max: ~45% less HBM writeback.
        o_refs[0][...] = y3.astype(o_refs[0].dtype)
        o_refs[1][...] = y_max.reshape(tn, cout).astype(o_refs[1].dtype)


def pfn_layer_pallas(inputs, weight, scale, bias, *, last_vfe=False,
                     concat_output=True, tile_n=None, matmul_dtype=None):
    """PFNLayer forward.

    inputs: (N, P, Cin); weight: (Cin, Cout); scale/bias: (Cout,) -- folded
    inference-mode BN scale/bias (use ones / linear bias when use_norm=False).

    last_vfe=True          -> (N, 1, Cout)
    else, concat_output    -> (N, P, 2*Cout)   (torch.cat([x, max.repeat], 2))
    else                   -> ((N, P, Cout), (N, 1, Cout))  un-replicated pair
    """
    N, P, Cin = inputs.shape
    Cout = weight.shape[1]
    itemsize = jnp.dtype(inputs.dtype).itemsize

    # Fold the BN per-channel scale into the weight (free host-side precompute).
    w_eff = (weight.astype(jnp.float32)
             * scale.reshape(1, Cout).astype(jnp.float32)).astype(weight.dtype)
    bias2 = bias.reshape(1, Cout).astype(jnp.float32)

    # ---- VMEM accounting: double-buffered blocks + in-kernel temporaries ----
    in_row = P * _round_up(Cin, _LANE) * itemsize
    if last_vfe:
        out_row = _round_up(Cout, _LANE) * itemsize
    elif concat_output:
        out_row = P * _round_up(2 * Cout, _LANE) * itemsize
    else:
        out_row = (P + 1) * _round_up(Cout, _LANE) * itemsize
    tmp_row = P * (_round_up(Cin, _LANE) + _round_up(Cout, _LANE)) * 4
    if (not last_vfe) and concat_output:
        tmp_row += P * _round_up(2 * Cout, _LANE) * 4
    per_pillar = 2 * (in_row + out_row) + tmp_row
    fixed = 2 * (_round_up(Cin, 8) * _round_up(Cout, _LANE)
                 + 8 * _round_up(Cout, _LANE)) * 4

    capacity = _vmem_capacity_bytes()
    if tile_n is None:
        usable = int(0.75 * capacity) - fixed - (2 << 20)
        tile_n = max(8, min(usable // per_pillar, 1024))
        tile_n = (tile_n // 8) * 8
        if N > 8:
            # Keep >= 2 grid steps so both v7x TensorCores get work.
            tile_n = max(8, min(tile_n, _round_up(-(-N // 2), 8)))
    tile_n = int(max(1, min(tile_n, _round_up(N, 8))))

    grid_n = -(-N // tile_n)        # cdiv; trailing partial block is masked
    vmem_need = tile_n * per_pillar + fixed + (4 << 20)
    vmem_limit = int(min(max(vmem_need, 8 << 20), int(0.85 * capacity)))

    x_spec = pl.BlockSpec((tile_n, P, Cin), lambda i: (i, 0, 0))
    w_spec = pl.BlockSpec((Cin, Cout), lambda i: (0, 0))
    b_spec = pl.BlockSpec((1, Cout), lambda i: (0, 0))

    if last_vfe:
        out_shape = jax.ShapeDtypeStruct((N, Cout), inputs.dtype)
        out_specs = pl.BlockSpec((tile_n, Cout), lambda i: (i, 0))
    elif concat_output:
        out_shape = jax.ShapeDtypeStruct((N, P, 2 * Cout), inputs.dtype)
        out_specs = pl.BlockSpec((tile_n, P, 2 * Cout), lambda i: (i, 0, 0))
    else:
        out_shape = (jax.ShapeDtypeStruct((N, P, Cout), inputs.dtype),
                     jax.ShapeDtypeStruct((N, Cout), inputs.dtype))
        out_specs = (pl.BlockSpec((tile_n, P, Cout), lambda i: (i, 0, 0)),
                     pl.BlockSpec((tile_n, Cout), lambda i: (i, 0)))

    kernel = functools.partial(_pfn_kernel, last_vfe=last_vfe,
                               concat_output=concat_output,
                               matmul_dtype=matmul_dtype)

    out = pl.pallas_call(
        kernel,
        out_shape=out_shape,
        grid_spec=pltpu.PrefetchScalarGridSpec(
            num_scalar_prefetch=0,
            grid=(grid_n,),
            in_specs=[x_spec, w_spec, b_spec],
            out_specs=out_specs,
        ),
        compiler_params=pltpu.CompilerParams(
            dimension_semantics=("parallel",),
            vmem_limit_bytes=vmem_limit,
        ),
    )(inputs, w_eff, bias2)

    if last_vfe:
        return out.reshape(N, 1, Cout)
    if concat_output:
        return out
    x_full, x_max = out
    return x_full, x_max.reshape(N, 1, Cout)


def pfn_layer_reference(inputs, weight, scale, bias, *, last_vfe=False):
    """Pure-JAX reference mirroring the PyTorch forward (inference-mode BN)."""
    x = jnp.einsum("npc,cd->npd", inputs, weight)
    x = x * scale.reshape(1, 1, -1) + bias.reshape(1, 1, -1)
    x = jnp.maximum(x, 0.0)
    x_max = jnp.max(x, axis=1, keepdims=True)
    if last_vfe:
        return x_max
    return jnp.concatenate([x, jnp.broadcast_to(x_max, x.shape)], axis=-1)


if __name__ == "__main__":
    # PFNLayer config: in_channels=10, out_channels=64, use_norm=True.
    in_channels = 10
    out_channels = 64
    N_pillars, N_points = 20, 32   # N % tile_n != 0 exercises the masked block
    eps = 1e-3

    key = jax.random.PRNGKey(0)

    def make_params(k, c):
        kg, kb, km, kv, kw = jax.random.split(k, 5)
        w = (jax.random.normal(kw, (in_channels, c), jnp.float32)
             * (1.0 / jnp.sqrt(in_channels)))
        gamma = 1.0 + 0.1 * jax.random.normal(kg, (c,), jnp.float32)
        beta = 0.1 * jax.random.normal(kb, (c,), jnp.float32)
        running_mean = 0.05 * jax.random.normal(km, (c,), jnp.float32)
        running_var = jnp.abs(1.0 + 0.1 * jax.random.normal(kv, (c,), jnp.float32))
        bn_scale = gamma / jnp.sqrt(running_var + eps)
        bn_bias = beta - running_mean * bn_scale
        return w, bn_scale, bn_bias

    k_x, k_p1, k_p2 = jax.random.split(key, 3)
    inputs = jax.random.normal(k_x, (N_pillars, N_points, in_channels),
                               jnp.float32)

    # --- Not-last layer: effective linear width = out_channels // 2 ----------
    w1, s1, b1 = make_params(k_p1, out_channels // 2)
    ref1 = pfn_layer_reference(inputs, w1, s1, b1, last_vfe=False)

    out1 = jax.block_until_ready(
        pfn_layer_pallas(inputs, w1, s1, b1, last_vfe=False, tile_n=8))
    assert out1.shape == (N_pillars, N_points, out_channels), out1.shape
    assert jnp.allclose(out1, ref1, atol=1e-5, rtol=1e-5), "mismatch (tile_n=8)"

    out1b = jax.block_until_ready(
        pfn_layer_pallas(inputs, w1, s1, b1, last_vfe=False, tile_n=None))
    assert jnp.allclose(out1b, ref1, atol=1e-5, rtol=1e-5), "mismatch (auto tile)"

    # Un-replicated two-output variant (consumer folds the concat downstream).
    x_nr, xmax_nr = jax.block_until_ready(
        pfn_layer_pallas(inputs, w1, s1, b1, last_vfe=False,
                         concat_output=False))
    assert x_nr.shape == (N_pillars, N_points, out_channels // 2)
    assert jnp.allclose(x_nr, ref1[..., :out_channels // 2],
                        atol=1e-5, rtol=1e-5), "mismatch (split x)"
    assert jnp.allclose(xmax_nr, ref1[:, :1, out_channels // 2:],
                        atol=1e-5, rtol=1e-5), "mismatch (split max)"

    # bf16 MXU operands (v6e/v7x optimization); f32 accumulation, loose tol.
    out1c = jax.block_until_ready(
        pfn_layer_pallas(inputs, w1, s1, b1, last_vfe=False,
                         matmul_dtype=jnp.bfloat16))
    assert jnp.allclose(out1c, ref1, atol=5e-2, rtol=5e-2), "mismatch (bf16 mxu)"

    # --- Last layer: full out_channels, returns the per-pillar max -----------
    w2, s2, b2 = make_params(k_p2, out_channels)
    ref2 = pfn_layer_reference(inputs, w2, s2, b2, last_vfe=True)
    out2 = jax.block_until_ready(
        pfn_layer_pallas(inputs, w2, s2, b2, last_vfe=True))
    assert out2.shape == (N_pillars, 1, out_channels), out2.shape
    assert jnp.allclose(out2, ref2, atol=1e-5, rtol=1e-5), "mismatch (last_vfe)"

    print("KERNEL_OK")
</pallas_src>

<mosaic_0001>
module attributes {stable_mosaic.version = 11 : i64} {
  func.func @_pfn_kernel(%arg0: i32, %arg1: memref<8x32x10xf32, #tpu.memory_space<vmem>>, %arg2: memref<10x32xf32, #tpu.memory_space<vmem>>, %arg3: memref<1x32xf32, #tpu.memory_space<vmem>>, %arg4: memref<8x32x64xf32, #tpu.memory_space<vmem>>) attributes {dimension_semantics = [#tpu.dimension_semantics<parallel>], iteration_bounds = array<i64: 3>, scalar_prefetch = 0 : i64, scratch_operands = 0 : i64, tpu.core_type = #tpu.core_type<tc>, window_params = [{transform_indices = @transform_0, window_bounds = array<i64: 8, 32, 10>}, {pipeline_mode = #tpu.pipeline_mode<synchronous>, transform_indices = @transform_1, window_bounds = array<i64: 10, 32>}, {pipeline_mode = #tpu.pipeline_mode<synchronous>, transform_indices = @transform_2, window_bounds = array<i64: 1, 32>}, {transform_indices = @transform_3, window_bounds = array<i64: 8, 32, 64>}]} {
    %c0 = arith.constant 0 : index
    %c0_0 = arith.constant 0 : index
    %c0_1 = arith.constant 0 : index
    %0 = vector.load %arg1[%c0, %c0_0, %c0_1] : memref<8x32x10xf32, #tpu.memory_space<vmem>>, vector<8x32x10xf32>
    %1 = vector.shape_cast %0 : vector<8x32x10xf32> to vector<256x10xf32>
    %c0_2 = arith.constant 0 : index
    %c0_3 = arith.constant 0 : index
    %2 = vector.load %arg2[%c0_2, %c0_3] : memref<10x32xf32, #tpu.memory_space<vmem>>, vector<10x32xf32>
    %cst = arith.constant dense<0.000000e+00> : vector<256x32xf32>
    %3 = tpu.matmul %1, %2, %cst {dimension_numbers = #tpu.dot_dimension_numbers<[1], [0], [0], [1], [0, 0, 1, 1], [], []>} : vector<256x10xf32>, vector<10x32xf32>, vector<256x32xf32> -> vector<256x32xf32>
    %c0_4 = arith.constant 0 : index
    %c0_5 = arith.constant 0 : index
    %4 = vector.load %arg3[%c0_4, %c0_5] : memref<1x32xf32, #tpu.memory_space<vmem>>, vector<1x32xf32>
    %5 = vector.broadcast %4 : vector<1x32xf32> to vector<256x32xf32>
    %6 = arith.addf %3, %5 : vector<256x32xf32>
    %cst_6 = arith.constant 0.000000e+00 : f32
    %7 = vector.broadcast %cst_6 : f32 to vector<256x32xf32>
    %8 = arith.maximumf %6, %7 : vector<256x32xf32>
    %9 = vector.shape_cast %8 : vector<256x32xf32> to vector<8x32x32xf32>
    %cst_7 = arith.constant dense<0xFF800000> : vector<8x32xf32>
    %10 = vector.multi_reduction <maximumf>, %9, %cst_7 [1] : vector<8x32x32xf32> to vector<8x32xf32>
    %11 = vector.shape_cast %10 : vector<8x32xf32> to vector<8x1x32xf32>
    %12 = vector.shape_cast %11 : vector<8x1x32xf32> to vector<8x1x32xf32>
    %13 = vector.broadcast %12 : vector<8x1x32xf32> to vector<8x32x32xf32>
    %14 = tpu.concatenate %9, %13 in 2 : vector<8x32x32xf32>, vector<8x32x32xf32> -> vector<8x32x64xf32>
    %c0_8 = arith.constant 0 : index
    %c0_9 = arith.constant 0 : index
    %c0_10 = arith.constant 0 : index
    %15 = vector.load %arg4[%c0_8, %c0_9, %c0_10] : memref<8x32x64xf32, #tpu.memory_space<vmem>>, vector<8x32x64xf32>
    tpu.vector_store %arg4[%c0_8, %c0_9, %c0_10], %14 {strides = array<i32>} : memref<8x32x64xf32, #tpu.memory_space<vmem>>, vector<8x32x64xf32>,
    return
  }
  func.func @transform_0(%arg0: i32) -> (i32, i32, i32) {
    %c0_i32 = arith.constant 0 : i32
    %c0_i32_0 = arith.constant 0 : i32
    %c0_i32_1 = arith.constant 0 : i32
    return %arg0, %c0_i32, %c0_i32_0 : i32, i32, i32
  }
  func.func @transform_1(%arg0: i32) -> (i32, i32) {
    %c0_i32 = arith.constant 0 : i32
    %c0_i32_0 = arith.constant 0 : i32
    %c0_i32_1 = arith.constant 0 : i32
    return %c0_i32, %c0_i32_0 : i32, i32
  }
  func.func @transform_2(%arg0: i32) -> (i32, i32) {
    %c0_i32 = arith.constant 0 : i32
    %c0_i32_0 = arith.constant 0 : i32
    %c0_i32_1 = arith.constant 0 : i32
    return %c0_i32, %c0_i32_0 : i32, i32
  }
  func.func @transform_3(%arg0: i32) -> (i32, i32, i32) {
    %c0_i32 = arith.constant 0 : i32
    %c0_i32_0 = arith.constant 0 : i32
    %c0_i32_1 = arith.constant 0 : i32
    return %arg0, %c0_i32, %c0_i32_0 : i32, i32, i32
  }
}

</mosaic_0001>

<bundles_post_ra>
// kernel: tpu_custom_call.1
= control target key start
LH: loop header
LB: loop body
LE: loop exit
PB: predicated region body
PF: predicated region fallthrough
CT: control target
= control target key end

     0   :  { %8 = vsyncpa [#allocation3], 0  ;;  %s1768_s0 = inlined_call_operand.vmem [shape: f32[20,32,10], index: 0, kind: input, shape index: {}]   ;;  %s1769_s1 = inlined_call_operand.vmem [shape: f32[10,32], index: 1, kind: input, shape index: {}]   ;;  %s1770_s2 = inlined_call_operand.vmem [shape: f32[1,32], index: 2, kind: input, shape index: {}]   ;;  %s1771_s3 = inlined_call_operand.hbm [shape: f32[20,32,64], index: 3, kind: output, shape index: {}]  }
   0x1   :  { %10 = vsyncpa [#allocation3 + $0x1], 0  ;;  %s1168_s12 = smov 0   ;;  %s1170_s13 = smov 0  }
   0x2   :  { %s1172_s14 = smov 0   ;;  %s1174_s15 = smov 0  }
   0x3 LB: > { %s1189_s16 = sadd.s32 4294967295, %s1142_s15   ;;  %s891_s17 = sadd.s32 4294967294, %s1142_s15   ;;  %s1142_s15 = sphi %s1174_s15, %s1835_s15   ;;  %s1138_s14 = sphi %s1172_s14, %s1834_s14   ;;  %s1134_s13 = sphi %s1170_s13, %s1833_s13   ;;  %s1130_s12 = sphi %s1168_s12, %s1832_s12  }
   0x4   : > { %s1193_s18 = sadd.s32 1, %s1142_s15   ;;  %s91_s19 = sadd.s32 1, %s1138_s14 }
   0x5   : > { %s88_s20 = ssub.s32 %s1142_s15, %s1193_s18  ;;  %p101_p0 = scmp.ne.s32.totalorder %s1138_s14, %s1134_s13 }
   0x6   : > { %p89_p1 = scmp.eq.s32.totalorder %s88_s20, 0  ;;  %p102_p2 = scmp.eq.s32.totalorder %s1189_s16, 2 }
   0x7   : > { %p107_p3 = scmp.ne.s32.totalorder %s1134_s13, %s1130_s12  ;;  %p108_p4 = scmp.eq.s32.totalorder %s891_s17, 2 }
   0x8   : > { %s1204_s21 = scalar_select %p89_p1, %s1138_s14, %s91_s19  }
   0x9   : > { %p1206_p5 = por %p102_p2, %p101_p0  ;;  %p1210_p6 = por %p108_p4, %p107_p3 }
   0xa   : > { %p894_p7 = scmp.ge.s32.totalorder %s1142_s15, 1  ;;  %p152_p8 = scmp.lt.s32.totalorder %s1142_s15, 4 }
   0xc   : > { %p153_p9 = pnand %p894_p7, %p152_p8 }
   0xd   : > { %s1223_s28 = sshll.u32 (!%p153_p9), %s1189_s16, 3  ;;  %s179_s9 = sand.u32 (!%p153_p9), 1, %s1134_s13  }
   0xe   : > { %156 = sbr.rel (%p153_p9) target bundleno = 421 (0x1a5), region = 32  ;;  %p188_p10 = scmp.lt.s32.totalorder (!%p153_p9), %s1223_s28, 19 }
   0xf   : > { %s1144_s10 = smov (!%p153_p9), 32   ;;  %s895_s11 = sshll.u32 (!%p153_p9), %s179_s9, 8 }
  0x10   : > { %s1556_s17 = scalar_lea.vmem (!%p153_p9), [#allocation2], %s895_s11  ;;  %s1708_s19 = scalar_lea.sflag (!%p153_p9), [#allocation3], %s179_s9 }
  0x13   : > { %v238_v0 = vld [vmem:[%s1769_s1 + $0x8] sm:$0x3]  ;;  %vm343_vm0 = vcmask 1041408   ;;  %v237_v1 = vld [vmem:[%s1769_s1] sm:$0xff]  ;;  %s189_s29 = scalar_select %p188_p10, %s1223_s28, 19  ;;  %vm246_vm1 = vcmask 80896  }
  0x14   : > { %985 = vmatprep.subr.msk.mxu0 %vm343_vm0, %v238_v0  ;;  %1037 = vmatprep.subr.msk.mxu1 %vm343_vm0, %v238_v0  ;;  %v1299_v34 = vld [vmem:[%s1770_s2] ss:$0 sm:$0xff]  ;;  %vm604_vm2 = vcmask 261120   ;;  %vm773_vm3 = vcmask 523264   ;;  %s815_s20 = ssub.s32 (%p1206_p5), 20, %s1223_s28 }
  0x15   : > { %986 = vmatpush3.msk.msra.mxu0 %vm343_vm0, %v238_v0  ;;  %1039 = vmatpush3.msk.msra.mxu1 %vm343_vm0, %v238_v0  ;;  %s945_s30 = sshll.u32 %s189_s29, 5  ;;  %p816_p11 = scmp.lt.s32.totalorder (%p1206_p5), %s815_s20, 8 }
  0x16   : > { %987 = vmatprep.subr.mxu0 %v237_v1  ;;  %1038 = vmatprep.subr.mxu1 %v237_v1  ;;  %s1230_s6 = scalar_lea.vmem %s1768_s0, %s945_s30 }
  0x17   : > { %988 = vmatpush3.msra.mxu0 %v237_v1  ;;  %1040 = vmatpush3.msra.mxu1 %v237_v1  ;;  %v205_v2 = vld [vmem:[%s1230_s6] sm:$0xff]  ;;  %v206_v4 = vld [vmem:[%s1230_s6 + $0x8] sm:$0xff]  ;;  %v207_v6 = vld [vmem:[%s1230_s6 + $0x10] sm:$0xff] }
  0x18   : > { %v221_v3 = vld [vmem:[%s1230_s6 + $0x80] sm:$0xff]  ;;  %989 = vmatprep.mubr.msk.f32.mxu0 %vm246_vm1, %v205_v2  ;;  %v222_v5 = vld [vmem:[%s1230_s6 + $0x88] sm:$0xff]  ;;  %v223_v7 = vld [vmem:[%s1230_s6 + $0x90] sm:$0xff] }
  0x19   : > { %1013 = vmatprep.mubr.msk.f32.mxu1 %vm246_vm1, %v221_v3  ;;  %990 = vmatmul.mubr.msk.f32.vlgmr.msra.gmra.mxu0 %vm246_vm1, %v206_v4  ;;  %v208_v8 = vld [vmem:[%s1230_s6 + $0x18] sm:$0xff]  ;;  %v209_v10 = vld [vmem:[%s1230_s6 + $0x20] sm:$0xff]  ;;  %v210_v12 = vld [vmem:[%s1230_s6 + $0x28] sm:$0xff] }
  0x1a   : > { %1014 = vmatmul.mubr.msk.f32.vlgmr.msra.gmra.mxu1 %vm246_vm1, %v222_v5  ;;  %992 = vmatprep.mubr.msk.f32.mxu0 %vm246_vm1, %v207_v6  ;;  %v224_v9 = vld [vmem:[%s1230_s6 + $0x98] sm:$0xff]  ;;  %v225_v11 = vld [vmem:[%s1230_s6 + $0xa0] sm:$0xff]  ;;  %v226_v13 = vld [vmem:[%s1230_s6 + $0xa8] sm:$0xff] }
  0x1b   : > { %1016 = vmatprep.mubr.msk.f32.mxu1 %vm246_vm1, %v223_v7  ;;  %v211_v14 = vld [vmem:[%s1230_s6 + $0x30] sm:$0xff]  ;;  %v212_v16 = vld [vmem:[%s1230_s6 + $0x38] sm:$0xff]  ;;  %v213_v18 = vld [vmem:[%s1230_s6 + $0x40] sm:$0xff] }
  0x1c   : > { %v227_v15 = vld [vmem:[%s1230_s6 + $0xb0] sm:$0xff]  ;;  %v228_v17 = vld [vmem:[%s1230_s6 + $0xb8] sm:$0xff]  ;;  %v229_v19 = vld [vmem:[%s1230_s6 + $0xc0] sm:$0xff] }
  0x1d   : > { %993 = vmatmul.mubr.msk.f32.gmra.mxu0 %vm246_vm1, %v208_v8  ;;  %v214_v20 = vld [vmem:[%s1230_s6 + $0x48] sm:$0xff]  ;;  %v215_v22 = vld [vmem:[%s1230_s6 + $0x50] sm:$0xff]  ;;  %v216_v24 = vld [vmem:[%s1230_s6 + $0x58] sm:$0xff] }
  0x1e   : > { %1017 = vmatmul.mubr.msk.f32.gmra.mxu1 %vm246_vm1, %v224_v9  ;;  %995 = vmatprep.mubr.msk.f32.mxu0 %vm246_vm1, %v209_v10  ;;  %v230_v21 = vld [vmem:[%s1230_s6 + $0xc8] sm:$0xff]  ;;  %v231_v23 = vld [vmem:[%s1230_s6 + $0xd0] sm:$0xff]  ;;  %v232_v25 = vld [vmem:[%s1230_s6 + $0xd8] sm:$0xff] }
  0x1f   : > { %1019 = vmatprep.mubr.msk.f32.mxu1 %vm246_vm1, %v225_v11  ;;  %v217_v26 = vld [vmem:[%s1230_s6 + $0x60] sm:$0xff]  ;;  %v218_v28 = vld [vmem:[%s1230_s6 + $0x68] sm:$0xff]  ;;  %v219_v30 = vld [vmem:[%s1230_s6 + $0x70] sm:$0xff] }
  0x20   : > { %v233_v27 = vld [vmem:[%s1230_s6 + $0xe0] sm:$0xff]  ;;  %v234_v29 = vld [vmem:[%s1230_s6 + $0xe8] sm:$0xff]  ;;  %v235_v31 = vld [vmem:[%s1230_s6 + $0xf0] sm:$0xff] }
  0x21   : > { %996 = vmatmul.mubr.msk.f32.gmra.mxu0 %vm246_vm1, %v210_v12  ;;  %v220_v32 = vld [vmem:[%s1230_s6 + $0x78] sm:$0xff] }
  0x22   : > { %1020 = vmatmul.mubr.msk.f32.gmra.mxu1 %vm246_vm1, %v226_v13  ;;  %998 = vmatprep.mubr.msk.f32.mxu0 %vm246_vm1, %v211_v14  ;;  %v236_v33 = vld [vmem:[%s1230_s6 + $0xf8] sm:$0xff] }
  0x23   : > { %1022 = vmatprep.mubr.msk.f32.mxu1 %vm246_vm1, %v227_v15 }
  0x25   : > { %999 = vmatmul.mubr.msk.f32.gmra.mxu0 %vm246_vm1, %v212_v16 }
  0x26   : > { %1023 = vmatmul.mubr.msk.f32.gmra.mxu1 %vm246_vm1, %v228_v17  ;;  %1001 = vmatprep.mubr.msk.f32.mxu0 %vm246_vm1, %v213_v18 }
  0x27   : > { %1025 = vmatprep.mubr.msk.f32.mxu1 %vm246_vm1, %v229_v19 }
  0x29   : > { %1002 = vmatmul.mubr.msk.f32.gmra.mxu0 %vm246_vm1, %v214_v20 }
  0x2a   : > { %1026 = vmatmul.mubr.msk.f32.gmra.mxu1 %vm246_vm1, %v230_v21  ;;  %1004 = vmatprep.mubr.msk.f32.mxu0 %vm246_vm1, %v215_v22 }
  0x2b   : > { %1028 = vmatprep.mubr.msk.f32.mxu1 %vm246_vm1, %v231_v23 }
  0x2d   : > { %1005 = vmatmul.mubr.msk.f32.gmra.mxu0 %vm246_vm1, %v216_v24 }
  0x2e   : > { %1029 = vmatmul.mubr.msk.f32.gmra.mxu1 %vm246_vm1, %v232_v25  ;;  %1007 = vmatprep.mubr.msk.f32.mxu0 %vm246_vm1, %v217_v26 }
  0x2f   : > { %1031 = vmatprep.mubr.msk.f32.mxu1 %vm246_vm1, %v233_v27 }
  0x31   : > { %1008 = vmatmul.mubr.msk.f32.gmra.mxu0 %vm246_vm1, %v218_v28 }
  0x32   : > { %1032 = vmatmul.mubr.msk.f32.gmra.mxu1 %vm246_vm1, %v234_v29  ;;  %1010 = vmatprep.mubr.msk.f32.mxu0 %vm246_vm1, %v219_v30 }
  0x33   : > { %1034 = vmatprep.mubr.msk.f32.mxu1 %vm246_vm1, %v235_v31 }
  0x35   : > { %1011 = vmatmul.mubr.msk.f32.gmra.mxu0 %vm246_vm1, %v220_v32 }
  0x36   : > { %1035 = vmatmul.mubr.msk.f32.gmra.mxu1 %vm246_vm1, %v236_v33 }
  0xd9   : > { %v991_v35 = vpop.f32.mrf.mxu0 }
  0xda   : > { %v1015_v36 = vpop.f32.mrf.mxu1  ;;  %v1302_v37 = vadd.f32 %v991_v35, %v1299_v34 }
  0xdb   : > { %v1305_v38 = vadd.f32 %v1015_v36, %v1299_v34  ;;  %v413_v39 = vpop.f32.mrf.mxu0 }
  0xdc   : > { %v493_v40 = vpop.f32.mrf.mxu1  ;;  %v1309_v42 = vadd.f32 %v1299_v34, %v413_v39  ;;  %v573_v44 = vmax.f32 %v1302_v37, 0.0 }
  0xdd   : > { %v1796_v41 = vmax.f32 %v1305_v38, 0.0  ;;  %v1312_v43 = vadd.f32 %v1299_v34, %v493_v40  ;;  %v994_v45 = vpop.f32.mrf.mxu0 }
  0xde   : > { %v1018_v46 = vpop.f32.mrf.mxu1  ;;  %v572_v48 = vmax.f32 %v1309_v42, 0.0  ;;  %v1321_v50 = vadd.f32 %v994_v45, %v1299_v34  ;;  %v606_v58 = vsel %vm604_vm2, %v573_v44, -inf }
  0xdf   : > { %v658_v47 = vsel %vm604_vm2, %v1796_v41, -inf  ;;  %v1798_v49 = vmax.f32 %v1312_v43, 0.0  ;;  %v1324_v51 = vadd.f32 %v1018_v46, %v1299_v34  ;;  %v423_v52 = vpop.f32.mrf.mxu0  ;;  %v1805_v42 = vmax.f32 %v1312_v43, 0.0 }
  0xe0   : > { %v503_v53 = vpop.f32.mrf.mxu1  ;;  %v605_v54 = vsel %vm604_vm2, %v572_v48, -inf  ;;  %v1333_v56 = vadd.f32 %v1299_v34, %v423_v52  ;;  %v1799_v60 = vmax.f32 %v1321_v50, 0.0 }
  0xe1   : > { %v657_v55 = vsel %vm604_vm2, %v1798_v49, -inf  ;;  %v1336_v57 = vadd.f32 %v1299_v34, %v503_v53  ;;  %v1790_v61 = vmax.f32 %v1324_v51, 0.0  ;;  %v997_v62 = vpop.f32.mrf.mxu0  ;;  %v607_v4 = vmax.f32 %v605_v54, %v606_v58 }
  0xe2   : > { %v659_v59 = vmax.f32 %v657_v55, %v658_v47  ;;  %v1021_v63 = vpop.f32.mrf.mxu1  ;;  %v1800_v0 = vmax.f32 %v1333_v56, 0.0  ;;  %v1346_v2 = vadd.f32 %v997_v62, %v1299_v34  ;;  %v610_v18 = vsel %vm604_vm2, %v1799_v60, -inf }
  0xe3   : > { %v1791_v1 = vmax.f32 %v1336_v57, 0.0  ;;  %v1349_v3 = vadd.f32 %v1021_v63, %v1299_v34  ;;  %v662_v5 = vsel %vm604_vm2, %v1790_v61, -inf  ;;  %v433_v6 = vpop.f32.mrf.mxu0 }
  0xe4   : > { %v513_v7 = vpop.f32.mrf.mxu1  ;;  %v608_v8 = vsel %vm604_vm2, %v1800_v0, -inf  ;;  %v1786_v10 = vmax.f32 %v1346_v2, 0.0  ;;  %v1363_v14 = vadd.f32 %v1299_v34, %v433_v6 }
  0xe5   : > { %v660_v9 = vsel %vm604_vm2, %v1791_v1, -inf  ;;  %v1779_v11 = vmax.f32 %v1349_v3, 0.0  ;;  %v609_v12 = vmax.f32 %v607_v4, %v608_v8  ;;  %v1366_v15 = vadd.f32 %v1299_v34, %v513_v7  ;;  %v1000_v16 = vpop.f32.mrf.mxu0 }
  0xe6   : > { %v661_v13 = vmax.f32 %v659_v59, %v660_v9  ;;  %v1024_v17 = vpop.f32.mrf.mxu1  ;;  %v1375_v20 = vadd.f32 %v1000_v16, %v1299_v34  ;;  %v1789_v24 = vmax.f32 %v1363_v14, 0.0  ;;  %v619_v32 = vsel %vm604_vm2, %v1786_v10, -inf }
  0xe7   : > { %v671_v19 = vsel %vm604_vm2, %v1779_v11, -inf  ;;  %v1378_v21 = vadd.f32 %v1024_v17, %v1299_v34  ;;  %v611_v22 = vmax.f32 %v609_v12, %v610_v18  ;;  %v1780_v25 = vmax.f32 %v1366_v15, 0.0  ;;  %v443_v26 = vpop.f32.mrf.mxu0 }
  0xe8   : > { %v663_v23 = vmax.f32 %v661_v13, %v662_v5  ;;  %v523_v27 = vpop.f32.mrf.mxu1  ;;  %v1782_v28 = vmax.f32 %v1375_v20, 0.0  ;;  %v1385_v30 = vadd.f32 %v1299_v34, %v443_v26  ;;  %v618_v33 = vsel %vm604_vm2, %v1789_v24, -inf }
  0xe9   : > { %v1777_v29 = vmax.f32 %v1378_v21, 0.0  ;;  %v1388_v31 = vadd.f32 %v1299_v34, %v523_v27  ;;  %v670_v35 = vsel %vm604_vm2, %v1780_v25, -inf  ;;  %v1003_v36 = vpop.f32.mrf.mxu0  ;;  %v612_v40 = vrot.slane %v611_v22, 4 }
  0xea   : > { %v1027_v39 = vpop.f32.mrf.mxu1  ;;  %v664_v45 = vrot.slane %v663_v23, 4  ;;  %v620_v46 = vmax.f32 %v618_v33, %v619_v32  ;;  %v672_v47 = vmax.f32 %v670_v35, %v671_v19  ;;  %v623_v52 = vsel %vm604_vm2, %v1782_v28, -inf }
  0xeb   : > { %v1783_v53 = vmax.f32 %v1385_v30, 0.0  ;;  %v1778_v54 = vmax.f32 %v1388_v31, 0.0  ;;  %v1405_v55 = vadd.f32 %v1003_v36, %v1299_v34  ;;  %v1408_v58 = vadd.f32 %v1027_v39, %v1299_v34  ;;  %v453_v59 = vpop.f32.mrf.mxu0 }
  0xec   : > { %v533_v62 = vpop.f32.mrf.mxu1  ;;  %v675_v63 = vsel %vm604_vm2, %v1777_v29, -inf  ;;  %v1414_v4 = vadd.f32 %v1299_v34, %v453_v59  ;;  %v613_v6 = vmax.f32 %v611_v22, %v612_v40  ;;  %v665_v36 = vmax.f32 %v663_v23, %v664_v45 }
  0xed   : > { %v1417_v5 = vadd.f32 %v1299_v34, %v533_v62  ;;  %v621_v7 = vsel %vm604_vm2, %v1783_v53, -inf  ;;  %v673_v8 = vsel %vm604_vm2, %v1778_v54, -inf  ;;  %v1772_v9 = vmax.f32 %v1405_v55, 0.0  ;;  %v1006_v13 = vpop.f32.mrf.mxu0 }
  0xee   : > { %v1775_v12 = vmax.f32 %v1408_v58, 0.0  ;;  %v1030_v16 = vpop.f32.mrf.mxu1  ;;  %v622_v17 = vmax.f32 %v620_v46, %v621_v7  ;;  %v674_v18 = vmax.f32 %v672_v47, %v673_v8  ;;  %v1773_v19 = vmax.f32 %v1414_v4, 0.0 }
  0xef   : > { %v1776_v22 = vmax.f32 %v1417_v5, 0.0  ;;  %v1433_v27 = vadd.f32 %v1006_v13, %v1299_v34  ;;  %v1436_v32 = vadd.f32 %v1030_v16, %v1299_v34  ;;  %v463_v33 = vpop.f32.mrf.mxu0  ;;  %v632_v40 = vsel %vm604_vm2, %v1772_v9, -inf }
  0xf0   : > { %v684_v26 = vsel %vm604_vm2, %v1775_v12, -inf  ;;  %v543_v35 = vpop.f32.mrf.mxu1  ;;  %v1439_v39 = vmax.f32 %v622_v17, %v623_v52  ;;  %v631_v46 = vsel %vm604_vm2, %v1773_v19, -inf  ;;  %v1450_v59 = vmax.f32 %v674_v18, %v675_v63 }
  0xf1   : > { %v683_v47 = vsel %vm604_vm2, %v1776_v22, -inf  ;;  %v633_v62 = vmax.f32 %v631_v46, %v632_v40  ;;  %v1774_v23 = vmax.f32 %v1433_v27, 0.0  ;;  %v1781_v45 = vmax.f32 %v1436_v32, 0.0  ;;  %v1009_v52 = vpop.f32.mrf.mxu0 }
  0xf2   : > { %v1033_v7 = vpop.f32.mrf.mxu1  ;;  %v685_v8 = vmax.f32 %v683_v47, %v684_v26  ;;  %v1455_v13 = vadd.f32 %v1299_v34, %v463_v33  ;;  %v1458_v16 = vadd.f32 %v1299_v34, %v543_v35  ;;  %v1461_v17 = vadd.f32 %v1009_v52, %v1299_v34 }
  0xf3   : > { %v625_v63 = vrot.slane %v1439_v39, 4  ;;  %v636_v18 = vsel %vm604_vm2, %v1774_v23, -inf  ;;  %v1468_v40 = vadd.f32 %v1033_v7, %v1299_v34  ;;  %v473_v46 = vpop.f32.mrf.mxu0  ;;  %v614_v47 = vrot.slane %v613_v6, 2 }
  0xf4   : > { %v553_v26 = vpop.f32.mrf.mxu1  ;;  %v1784_v33 = vmax.f32 %v1455_v13, 0.0  ;;  %v1785_v35 = vmax.f32 %v1458_v16, 0.0  ;;  %v1787_v9 = vmax.f32 %v1461_v17, 0.0  ;;  %v1474_v52 = vadd.f32 %v1299_v34, %v473_v46 }
  0xf5   : > { %v688_v19 = vsel %vm604_vm2, %v1781_v45, -inf  ;;  %v1792_v23 = vmax.f32 %v1468_v40, 0.0  ;;  %v1481_v7 = vadd.f32 %v1299_v34, %v553_v26  ;;  %v1012_v12 = vpop.f32.mrf.mxu0  ;;  %v615_v29 = vmax.f32 %v613_v6, %v614_v47 }
  0xf6   : > { %v1036_v22 = vpop.f32.mrf.mxu1  ;;  %v634_v54 = vsel %vm604_vm2, %v1784_v33, -inf  ;;  %v686_v46 = vsel %vm604_vm2, %v1785_v35, -inf  ;;  %v1788_v11 = vmax.f32 %v1474_v52, 0.0  ;;  %v666_v25 = vrot.slane %v665_v36, 2 }
  0xf7   : > { %v635_v45 = vmax.f32 %v633_v62, %v634_v54  ;;  %v687_v28 = vmax.f32 %v685_v8, %v686_v46  ;;  %v645_v26 = vsel %vm604_vm2, %v1787_v9, -inf  ;;  %v1794_v53 = vmax.f32 %v1481_v7, 0.0  ;;  %v483_v10 = vpop.f32.mrf.mxu0 }
  0xf8   : > { %v644_v6 = vsel %vm604_vm2, %v1788_v11, -inf  ;;  %v1498_v47 = vadd.f32 %v1012_v12, %v1299_v34  ;;  %v1501_v33 = vadd.f32 %v1036_v22, %v1299_v34  ;;  %v616_v35 = vrot.slane %v615_v29, 1  ;;  %v563_v54 = vpop.f32.mrf.mxu1 }
  0xf9   : > { %v637_v62 = vmax.f32 %v635_v45, %v636_v18  ;;  %v689_v8 = vmax.f32 %v687_v28, %v688_v19  ;;  %v697_v46 = vsel %vm604_vm2, %v1792_v23, -inf  ;;  %v696_v9 = vsel %vm604_vm2, %v1794_v53, -inf }
  0xfa   : > { %v646_v11 = vmax.f32 %v644_v6, %v645_v26  ;;  %v1793_v12 = vmax.f32 %v1501_v33, 0.0  ;;  %v617_v24 = vmax.f32 %v615_v29, %v616_v35  ;;  %v1511_v1 = vadd.f32 %v1299_v34, %v483_v10 }
  0xfb   : > { %v638_v61 = vrot.slane %v637_v62, 4  ;;  %v690_v22 = vrot.slane %v689_v8, 4  ;;  %v1514_v45 = vadd.f32 %v1299_v34, %v563_v54  ;;  %v698_v28 = vmax.f32 %v696_v9, %v697_v46 }
  0xfc   : > { %v587_v19 = vmax.f32 %v1498_v47, 0.0  ;;  %717 = vrot.lane.b32.xlu0 %v617_v24, %s1144_s10  ;;  %v667_v18 = vmax.f32 %v665_v36, %v666_v25  ;;  %v677_v26 = vrot.slane %v1450_v59, 4  ;;  %v1795_v6 = vmax.f32 %v1511_v1, 0.0 }
  0xfd   : > { %v1797_v29 = vmax.f32 %v1514_v45, 0.0  ;;  %v626_v35 = vmax.f32 %v1439_v39, %v625_v63  ;;  %v639_v10 = vmax.f32 %v637_v62, %v638_v61  ;;  %v701_v34 = vsel %vm604_vm2, %v1793_v12, -inf }
  0xfe   : > { %v668_v9 = vrot.slane %v667_v18, 1  ;;  %v678_v54 = vmax.f32 %v1450_v59, %v677_v26  ;;  %v691_v46 = vmax.f32 %v689_v8, %v690_v22  ;;  %v647_v24 = vsel %vm604_vm2, %v1795_v6, -inf }
  0xff   : > { %v699_v25 = vsel %vm604_vm2, %v1797_v29, -inf  ;;  %v627_v36 = vrot.slane %v626_v35, 2  ;;  %v640_v23 = vrot.slane %v639_v10, 2  ;;  %v648_v39 = vmax.f32 %v646_v11, %v647_v24 }
 0x100   : > { %v700_v61 = vmax.f32 %v698_v28, %v699_v25  ;;  %v669_v63 = vmax.f32 %v667_v18, %v668_v9  ;;  %v679_v62 = vrot.slane %v678_v54, 2  ;;  %v649_v12 = vsel %vm604_vm2, %v587_v19, -inf }
 0x101   : > { %v628_v59 = vmax.f32 %v626_v35, %v627_v36  ;;  %v641_v8 = vmax.f32 %v639_v10, %v640_v23  ;;  %v692_v22 = vrot.slane %v691_v46, 2  ;;  %v650_v26 = vmax.f32 %v648_v39, %v649_v12 }
 0x102   : > { %v702_v53 = vmax.f32 %v700_v61, %v701_v34  ;;  %725 = vrot.lane.b32.xlu0 %v669_v63, %s1144_s10  ;;  %v680_v6 = vmax.f32 %v678_v54, %v679_v62  ;;  %v1804_v39 = vmax.f32 %v1321_v50, 0.0  ;;  %v1808_v62 = vmax.f32 %v1324_v51, 0.0 }
 0x103   : > { %v629_v41 = vrot.slane %v628_v59, 1  ;;  %v693_v29 = vmax.f32 %v691_v46, %v692_v22  ;;  %v651_v49 = vrot.slane %v650_v26, 4  ;;  %v642_v28 = vrot.slane %v641_v8, 1 }
 0x104   : > { %v703_v60 = vrot.slane %v702_v53, 4  ;;  %v681_v11 = vrot.slane %v680_v6, 1  ;;  %v1809_v51 = vmax.f32 %v1363_v14, 0.0  ;;  %v1814_v14 = vmax.f32 %v1349_v3, 0.0 }
 0x105   : > { %v630_v18 = vmax.f32 %v628_v59, %v629_v41  ;;  %v694_v9 = vrot.slane %v693_v29, 1  ;;  %v652_v25 = vmax.f32 %v650_v26, %v651_v49  ;;  %v643_v12 = vmax.f32 %v641_v8, %v642_v28 }
 0x106   : > { %v682_v24 = vmax.f32 %v680_v6, %v681_v11  ;;  %v704_v0 = vmax.f32 %v702_v53, %v703_v60  ;;  %v1810_v8 = vmax.f32 %v1346_v2, 0.0  ;;  %v1811_v26 = vmax.f32 %v1385_v30, 0.0 }
 0x107   : > { %719 = vrot.lane.b32.xlu0 %v630_v18, %s1144_s10  ;;  %v695_v23 = vmax.f32 %v693_v29, %v694_v9  ;;  %v653_v35 = vrot.slane %v652_v25, 2  ;;  %v1803_v29 = vmax.f32 %v1333_v56, 0.0  ;;  %v1807_v56 = vmax.f32 %v1336_v57, 0.0 }
 0x108   : > { %727 = vrot.lane.b32.xlu1 %v682_v24, %s1144_s10  ;;  %v705_v10 = vrot.slane %v704_v0, 2  ;;  %v1812_v28 = vmax.f32 %v1375_v20, 0.0  ;;  %v1813_v9 = vmax.f32 %v1366_v15, 0.0  ;;  %v1815_v2 = vmax.f32 %v1388_v31, 0.0 }
 0x109   : > { %v654_v34 = vmax.f32 %v652_v25, %v653_v35  ;;  %v1816_v30 = vmax.f32 %v1378_v21, 0.0  ;;  %v1817_v20 = vmax.f32 %v1417_v5, 0.0  ;;  %v1818_v31 = vmax.f32 %v1408_v58, 0.0 }
 0x10a   : > { %v706_v54 = vmax.f32 %v704_v0, %v705_v10  ;;  %v1819_v10 = vmax.f32 %v1458_v16, 0.0  ;;  %v1822_v5 = vmax.f32 %v1405_v55, 0.0  ;;  %v1823_v58 = vmax.f32 %v1455_v13, 0.0 }
 0x10b   : > { %729 = vrot.lane.b32.xlu0 %v695_v23, %s1144_s10  ;;  %v655_v41 = vrot.slane %v654_v34, 1  ;;  %v1824_v16 = vmax.f32 %v1433_v27, 0.0  ;;  %v1826_v13 = vmax.f32 %v1461_v17, 0.0  ;;  %v1830_v47 = vmax.f32 %v1514_v45, 0.0 }
 0x10c   : > { %721 = vrot.lane.b32.xlu1 %v643_v12, %s1144_s10  ;;  %v707_v6 = vrot.slane %v706_v54, 1 }
 0x10d   : > { %v656_v46 = vmax.f32 %v654_v34, %v655_v41 }
 0x10e   : > { %v708_v49 = vmax.f32 %v706_v54, %v707_v6  ;;  %v1820_v54 = vmax.f32 %v1436_v32, 0.0 }
 0x110   : > { %723 = vrot.lane.b32.xlu1 %v656_v46, %s1144_s10  ;;  %v1821_v46 = vmax.f32 %v1414_v4, 0.0  ;;  %v1825_v4 = vmax.f32 %v1474_v52, 0.0  ;;  %v1828_v52 = vmax.f32 %v1481_v7, 0.0 }
 0x114   : > { %731 = vrot.lane.b32.xlu1 %v708_v49, %s1144_s10 }
 0x16e   : > { %v718_v60 = vpop.permute.xlu0 %717 }
 0x16f   : > { %v741_v0 = vsel %vm604_vm2, %v572_v48, %v718_v60  ;;  %v742_v53 = vsel %vm604_vm2, %v573_v44, %v718_v60  ;;  %v743_v36 = vsel %vm604_vm2, %v1803_v29, %v718_v60  ;;  %v744_v61 = vsel %vm604_vm2, %v1804_v39, %v718_v60 }
 0x170   : > { %774 = vst.msk [vmem:[%s1556_s17] sm:$0xff] %vm773_vm3, %v741_v0  ;;  %775 = vst.msk [vmem:[%s1556_s17 + $0x8] sm:$0xff] %vm773_vm3, %v742_v53  ;;  %v1806_v48 = vmax.f32 %v1305_v38, 0.0  ;;  %v1827_v53 = vmax.f32 %v1511_v1, 0.0  ;;  %v1829_v39 = vmax.f32 %v1468_v40, 0.0 }
 0x171   : > { %776 = vst.msk [vmem:[%s1556_s17 + $0x10] sm:$0xff] %vm773_vm3, %v743_v36  ;;  %777 = vst.msk [vmem:[%s1556_s17 + $0x18] sm:$0xff] %vm773_vm3, %v744_v61 }
 0x174   : > { %v726_v37 = vpop.permute.xlu0 %725 }
 0x175   : > { %v757_v44 = vsel %vm604_vm2, %v1805_v42, %v726_v37  ;;  %v758_v50 = vsel %vm604_vm2, %v1806_v48, %v726_v37  ;;  %v759_v63 = vsel %vm604_vm2, %v1807_v56, %v726_v37  ;;  %v760_v59 = vsel %vm604_vm2, %v1808_v62, %v726_v37 }
 0x176   : > { %790 = vst.msk [vmem:[%s1556_s17 + $0x80] sm:$0xff] %vm773_vm3, %v757_v44  ;;  %791 = vst.msk [vmem:[%s1556_s17 + $0x88] sm:$0xff] %vm773_vm3, %v758_v50  ;;  %v1831_v37 = vmax.f32 %v1501_v33, 0.0 }
 0x177   : > { %792 = vst.msk [vmem:[%s1556_s17 + $0x90] sm:$0xff] %vm773_vm3, %v759_v63  ;;  %793 = vst.msk [vmem:[%s1556_s17 + $0x98] sm:$0xff] %vm773_vm3, %v760_v59 }
 0x179   : > { %v720_v38 = vpop.permute.xlu0 %719 }
 0x17a   : > { %v728_v43 = vpop.permute.xlu1 %727  ;;  %v745_v57 = vsel %vm604_vm2, %v1809_v51, %v720_v38  ;;  %v746_v22 = vsel %vm604_vm2, %v1810_v8, %v720_v38  ;;  %v747_v11 = vsel %vm604_vm2, %v1811_v26, %v720_v38  ;;  %v748_v18 = vsel %vm604_vm2, %v1812_v28, %v720_v38 }
 0x17b   : > { %v761_v24 = vsel %vm604_vm2, %v1813_v9, %v728_v43  ;;  %v762_v25 = vsel %vm604_vm2, %v1814_v14, %v728_v43  ;;  %v763_v23 = vsel %vm604_vm2, %v1815_v2, %v728_v43  ;;  %v764_v12 = vsel %vm604_vm2, %v1816_v30, %v728_v43  ;;  %778 = vst.msk [vmem:[%s1556_s17 + $0x20] sm:$0xff] %vm773_vm3, %v745_v57 }
 0x17c   : > { %779 = vst.msk [vmem:[%s1556_s17 + $0x28] sm:$0xff] %vm773_vm3, %v746_v22  ;;  %780 = vst.msk [vmem:[%s1556_s17 + $0x30] sm:$0xff] %vm773_vm3, %v747_v11 }
 0x17d   : > { %781 = vst.msk [vmem:[%s1556_s17 + $0x38] sm:$0xff] %vm773_vm3, %v748_v18  ;;  %794 = vst.msk [vmem:[%s1556_s17 + $0xa0] sm:$0xff] %vm773_vm3, %v761_v24  ;;  %v730_v3 = vpop.permute.xlu0 %729 }
 0x17e   : > { %795 = vst.msk [vmem:[%s1556_s17 + $0xa8] sm:$0xff] %vm773_vm3, %v762_v25  ;;  %796 = vst.msk [vmem:[%s1556_s17 + $0xb0] sm:$0xff] %vm773_vm3, %v763_v23  ;;  %v722_v15 = vpop.permute.xlu1 %721  ;;  %v765_v21 = vsel %vm604_vm2, %v1817_v20, %v730_v3  ;;  %v766_v35 = vsel %vm604_vm2, %v1818_v31, %v730_v3  ;;  %v767_v34 = vsel %vm604_vm2, %v1819_v10, %v730_v3 }
 0x17f   : > { %797 = vst.msk [vmem:[%s1556_s17 + $0xb8] sm:$0xff] %vm773_vm3, %v764_v12  ;;  %v768_v41 = vsel %vm604_vm2, %v1820_v54, %v730_v3  ;;  %v749_v6 = vsel %vm604_vm2, %v1821_v46, %v722_v15  ;;  %v750_v49 = vsel %vm604_vm2, %v1822_v5, %v722_v15  ;;  %v751_v60 = vsel %vm604_vm2, %v1823_v58, %v722_v15 }
 0x180   : > { %v752_v32 = vsel %vm604_vm2, %v1824_v16, %v722_v15  ;;  %798 = vst.msk [vmem:[%s1556_s17 + $0xc0] sm:$0xff] %vm773_vm3, %v765_v21  ;;  %799 = vst.msk [vmem:[%s1556_s17 + $0xc8] sm:$0xff] %vm773_vm3, %v766_v35 }
 0x181   : > { %800 = vst.msk [vmem:[%s1556_s17 + $0xd0] sm:$0xff] %vm773_vm3, %v767_v34  ;;  %801 = vst.msk [vmem:[%s1556_s17 + $0xd8] sm:$0xff] %vm773_vm3, %v768_v41 }
 0x182   : > { %782 = vst.msk [vmem:[%s1556_s17 + $0x40] sm:$0xff] %vm773_vm3, %v749_v6  ;;  %783 = vst.msk [vmem:[%s1556_s17 + $0x48] sm:$0xff] %vm773_vm3, %v750_v49  ;;  %v724_v55 = vpop.permute.xlu1 %723 }
 0x183   : > { %784 = vst.msk [vmem:[%s1556_s17 + $0x50] sm:$0xff] %vm773_vm3, %v751_v60  ;;  %785 = vst.msk [vmem:[%s1556_s17 + $0x58] sm:$0xff] %vm773_vm3, %v752_v32  ;;  %v753_v27 = vsel %vm604_vm2, %v1825_v4, %v724_v55  ;;  %v754_v0 = vsel %vm604_vm2, %v1826_v13, %v724_v55  ;;  %v755_v29 = vsel %vm604_vm2, %v1827_v53, %v724_v55 }
 0x184   : > { %v756_v36 = vsel %vm604_vm2, %v587_v19, %v724_v55  ;;  %786 = vst.msk [vmem:[%s1556_s17 + $0x60] sm:$0xff] %vm773_vm3, %v753_v27  ;;  %787 = vst.msk [vmem:[%s1556_s17 + $0x68] sm:$0xff] %vm773_vm3, %v754_v0 }
 0x185   : > { %788 = vst.msk [vmem:[%s1556_s17 + $0x70] sm:$0xff] %vm773_vm3, %v755_v29  ;;  %789 = vst.msk [vmem:[%s1556_s17 + $0x78] sm:$0xff] %vm773_vm3, %v756_v36  ;;  %813 = sbr.rel (!%p1206_p5) target bundleno = 421 (0x1a5), region = 36 }
 0x186   : > { %v732_v17 = vpop.permute.xlu1 %731 }
 0x187   : > { %v769_v1 = vsel %vm604_vm2, %v1828_v52, %v732_v17  ;;  %v770_v61 = vsel %vm604_vm2, %v1829_v39, %v732_v17  ;;  %v771_v19 = vsel %vm604_vm2, %v1830_v47, %v732_v17  ;;  %v772_v42 = vsel %vm604_vm2, %v1831_v37, %v732_v17 }
 0x188   : > { %802 = vst.msk [vmem:[%s1556_s17 + $0xe0] sm:$0xff] %vm773_vm3, %v769_v1  ;;  %803 = vst.msk [vmem:[%s1556_s17 + $0xe8] sm:$0xff] %vm773_vm3, %v770_v61 }
 0x189   : > { %804 = vst.msk [vmem:[%s1556_s17 + $0xf0] sm:$0xff] %vm773_vm3, %v771_v19  ;;  %805 = vst.msk [vmem:[%s1556_s17 + $0xf8] sm:$0xff] %vm773_vm3, %v772_v42 }
 0x18a   : > { %s1837_s20 = smov (!%p816_p11, %s815_s20), 8 }
 0x18b   : > { %s1713_s24 = sshll.u32 %s1837_s20, 9 }
 0x18c   : > { %s821_s25 = ssub.s32 4096, %s1713_s24 }
 0x18d   : > { %822 = vsyncadd %s1708_s19, %s821_s25  ;;  %p937_p12 = scmp.ne.s32.totalorder %s1713_s24, 0  ;;  %s948_s26 = sshll.u32 %s1189_s16, 12 }
 0x18e   : > { %s1722_s29 = scalar_lea.hbm %s1771_s3, %s948_s26  ;;  %s829_s28 = sshll.u32 %s1556_s17, 4  ;;  %s1725_s28 = int_to_ptr.vmem [resolvable:$true] %s829_s28 }
 0x18f   : > { %s1082_s30 = scalar_lea.vmem %s1725_s28, %s1713_s24  ;;  %s1145_s4 = smov [#allocation2]  }
 0x190   : > { %p1083_p13 = scmp.ne.s32.totalorder %s1725_s28, %s1082_s30  ;;  %s1086_s5 = sshll.u32 %s1145_s4, 4  ;;  %s1087_s5 = int_to_ptr.vmem [resolvable:$false] %s1086_s5 }
 0x191   : > { %s1088_s16 = scalar_lea.vmem %s1087_s5, 8192  ;;  %p1089_p2 = scmp.lt.s32.totalorder %s1725_s28, %s1087_s5 }
 0x192   : > { %p1084_p0 = pnand %p1083_p13, %p937_p12  ;;  %p1090_p3 = scmp.lt.s32.totalorder %s1088_s16, %s1082_s30 }
 0x194   : > { %p1085_p1 = pneg %p1084_p0  ;;  %p1091_p4 = por %p1090_p3, %p1089_p2 }
 0x196   : > { %p1092_p5 = pnand %p1091_p4, %p1085_p1 }
 0x198   : > { %1095 = shalt.err (!%p1092_p5)
}
 0x199   : > { %s1096_s6 = scalar_lea.hbm %s1722_s29, %s1713_s24  ;;  %s1100_s9 = scalar_lea.hbm %s1771_s3, 10240 }
 0x19a   : > { %p1097_p7 = scmp.ne.s32.totalorder %s1722_s29, %s1096_s6  ;;  %p1101_p10 = scmp.lt.s32.totalorder %s1722_s29, %s1771_s3 }
 0x19b   : > { %p1102_p11 = scmp.lt.s32.totalorder %s1100_s9, %s1096_s6 }
 0x19c   : > { %p1098_p8 = pnand %p1097_p7, %p937_p12 }
 0x19d   : > { %p1103_p13 = por %p1102_p11, %p1101_p10 }
 0x19e   : > { %p1099_p9 = pneg %p1098_p8 }
 0x1a0   : > { %p1104_p0 = pnand %p1103_p13, %p1099_p9 }
 0x1a2   : > { %1107 = shalt.err (!%p1104_p0)
}
 0x1a3   : > { %s1146_s17 = smov 128   ;;  %s1147_s20 = smov 8  }
 0x1a4   : > { %835 = dma.vmem_to_hbm [thread:$0]  (%p937_p12), %s1725_s28, %s1713_s24, %s1722_s29, %s1708_s19, %s1146_s17, %s1146_s17, %s1147_s20  }
 0x1a5 PF: > { %p1046_p1 = scmp.ge.s32.totalorder %s1142_s15, 2  ;;  %s844_s25 = sand.u32 1, %s1130_s12  }
 0x1a6   : > { %s845_s26 = scalar_lea.sflag [#allocation3], %s844_s25 }
 0x1a7   : > { %p1043_p2 = pnand %p1046_p1, %p1210_p6 }
 0x1a9   : > { %p1044_p3 = pneg %p1043_p2 }
 0x1ab   : > { %1125 = dma.done.wait (%p1044_p3), %s845_s26, 4096  }
 0x1ac   : > { %1127 = vsyncadd (%p1044_p3), %s845_s26, 4294963200  ;;  %p13_p4 = scmp.ge.s32.totalorder %s1193_s18, 5   ;;  %s1832_s12 = smov %s1134_s13 }
 0x1ad   : > { %s1833_s13 = smov %s1138_s14  ;;  %s1834_s14 = smov %s1204_s21 }
 0x1ae   : > { %s1835_s15 = smov %s1193_s18  ;;  %15 = sbr.rel (!%p13_p4) target bundleno = 3 (0x3), region = 67 }
 0x1b3   :  { %850 = vsyncpa [#allocation3], 1 }
 0x1b4   :  { %852 = vsyncpa [#allocation3 + $0x1], 1 }

</bundles_post_ra>
